<compile_context>
chip_gen: v7x
topology: tpu7x:2x2x1
jax: 0.10.0
libtpu: 0.0.40
codegen_flags: <defaults>
</compile_context>

<pallas_src>
import jax
import jax.numpy as jnp
from jax import lax
from jax.experimental import pallas as pl
from jax.experimental.pallas import tpu as pltpu


def smoothing_loss_kernel(x_ref, partial_ref):
    # x block: (Bt, H, W) -- W on lanes, H on sublanes, Bt images per step.
    x = x_ref[...]
    H = x.shape[1]
    W = x.shape[2]

    # --- Separable Sobel ---------------------------------------------------
    # Lane-axis (W) pass: only 3 shifted views of the tile.
    left = x[:, :, 0:W - 2]
    cent = x[:, :, 1:W - 1]
    right = x[:, :, 2:W]
    d = (left - right).astype(jnp.float32)                # horizontal diff
    s = (left + 2.0 * cent + right).astype(jnp.float32)   # horizontal smooth

    # Sublane-axis (H) pass (cheap shifts along second-to-last dim).
    # xsobel = [[1,0,-1],[2,0,-2],[1,0,-1]]  -> xg = d_top + 2*d_mid + d_bot
    # ysobel = [[1,2,1],[0,0,0],[-1,-2,-1]]  -> yg = s_top - s_bot
    xg = d[:, 0:H - 2, :] + 2.0 * d[:, 1:H - 1, :] + d[:, 2:H, :]
    yg = s[:, 0:H - 2, :] - s[:, 2:H, :]

    total = jnp.sum(jnp.abs(xg) + jnp.abs(yg))             # one reduce / block

    # Per-block partial sum, written into a lane-dense (1,8,128) output slab:
    # value at [0,0,0], zeros elsewhere (wrapper sums all partial slabs).
    row = lax.broadcasted_iota(jnp.int32, partial_ref.shape, 1)
    col = lax.broadcasted_iota(jnp.int32, partial_ref.shape, 2)
    partial_ref[...] = jnp.where((row == 0) & (col == 0), total,
                                 jnp.float32(0.0))


def smoothing_loss(x, *, target_block_bytes=2 * 1024 * 1024):
    """x: (N, C, H, W) NCHW. Each channel is treated as an independent
    single-channel image (for C == 1 this matches the PyTorch module exactly)."""
    N, C, H, W = x.shape
    assert H >= 3 and W >= 3, "Sobel 'valid' conv needs H >= 3 and W >= 3."
    NC = N * C
    x3 = x.reshape(NC, H, W)

    itemsize = jnp.dtype(x.dtype).itemsize
    img_bytes = H * W * itemsize
    # Images per block: as many as fit ~2 MiB (double-buffered -> ~4 MiB VMEM),
    # safe under the default scoped-VMEM limit on v5e/v6e/v7x.
    bt = max(1, min(NC, target_block_bytes // img_bytes))
    g = pl.cdiv(NC, bt)
    pad = g * bt - NC
    if pad:
        # Zero padding contributes exactly 0 to the loss (Sobel of zeros = 0).
        x3 = jnp.pad(x3, ((0, pad), (0, 0), (0, 0)))

    flops = 14 * NC * (H - 2) * (W - 2)
    bytes_accessed = g * bt * img_bytes + g * 8 * 128 * 4

    partials = pl.pallas_call(
        smoothing_loss_kernel,
        out_shape=jax.ShapeDtypeStruct((g, 8, 128), jnp.float32),
        grid=(g,),
        in_specs=[pl.BlockSpec((bt, H, W), lambda i: (i, 0, 0))],
        out_specs=pl.BlockSpec((1, 8, 128), lambda i: (i, 0, 0)),
        compiler_params=pltpu.CompilerParams(
            # Each grid step writes its own partial block -> no carried state,
            # safe to shard the batch axis across TensorCores (v7x megacore).
            dimension_semantics=("parallel",)),
        cost_estimate=pl.CostEstimate(
            flops=int(flops), transcendentals=0,
            bytes_accessed=int(bytes_accessed)),
    )(x3)

    return jnp.sum(partials)


def _reference(x):
    # Pure-JAX reference (direct 8-shifted-view Sobel) for a sanity check.
    N, C, H, W = x.shape
    xr = x.reshape(N * C, H, W).astype(jnp.float32)
    tl = xr[:, 0:H - 2, 0:W - 2]; tc = xr[:, 0:H - 2, 1:W - 1]; tr = xr[:, 0:H - 2, 2:W]
    ml = xr[:, 1:H - 1, 0:W - 2]; mr = xr[:, 1:H - 1, 2:W]
    bl = xr[:, 2:H, 0:W - 2]; bc = xr[:, 2:H, 1:W - 1]; br = xr[:, 2:H, 2:W]
    xg = (tl - tr) + 2.0 * (ml - mr) + (bl - br)
    yg = (tl + 2.0 * tc + tr) - (bl + 2.0 * bc + br)
    return jnp.sum(jnp.abs(xg) + jnp.abs(yg))


if __name__ == "__main__":
    key = jax.random.PRNGKey(0)
    # Single-channel NCHW input, as the module's Sobel filters imply.
    x = jax.random.normal(key, (2, 1, 16, 16), dtype=jnp.float32)

    loss = smoothing_loss(x)
    jax.block_until_ready(loss)

    ref = _reference(x)
    assert jnp.allclose(loss, ref, rtol=1e-5, atol=1e-4), (loss, ref)

    print("KERNEL_OK")
</pallas_src>

<mosaic_0001>
module attributes {stable_mosaic.version = 11 : i64} {
  func.func @smoothing_loss_kernel(%arg0: i32, %arg1: memref<2x16x16xf32, #tpu.memory_space<vmem>>, %arg2: memref<1x8x128xf32, #tpu.memory_space<vmem>>) attributes {dimension_semantics = [#tpu.dimension_semantics<parallel>], iteration_bounds = array<i64: 1>, scalar_prefetch = 0 : i64, scratch_operands = 0 : i64, tpu.core_type = #tpu.core_type<tc>, window_params = [{transform_indices = @transform_0, window_bounds = array<i64: 2, 16, 16>}, {transform_indices = @transform_1, window_bounds = array<i64: 1, 8, 128>}]} {
    %c0 = arith.constant 0 : index
    %c0_0 = arith.constant 0 : index
    %c0_1 = arith.constant 0 : index
    %0 = vector.load %arg1[%c0, %c0_0, %c0_1] : memref<2x16x16xf32, #tpu.memory_space<vmem>>, vector<2x16x16xf32>
    %1 = vector.extract_strided_slice %0 {offsets = [0, 0, 0], sizes = [2, 16, 14], strides = [1, 1, 1]} : vector<2x16x16xf32> to vector<2x16x14xf32>
    %2 = vector.extract_strided_slice %0 {offsets = [0, 0, 1], sizes = [2, 16, 14], strides = [1, 1, 1]} : vector<2x16x16xf32> to vector<2x16x14xf32>
    %3 = vector.extract_strided_slice %0 {offsets = [0, 0, 2], sizes = [2, 16, 14], strides = [1, 1, 1]} : vector<2x16x16xf32> to vector<2x16x14xf32>
    %4 = arith.subf %1, %3 : vector<2x16x14xf32>
    %cst = arith.constant 2.000000e+00 : f32
    %5 = vector.broadcast %cst : f32 to vector<2x16x14xf32>
    %6 = arith.mulf %5, %2 : vector<2x16x14xf32>
    %7 = arith.addf %1, %6 : vector<2x16x14xf32>
    %8 = arith.addf %7, %3 : vector<2x16x14xf32>
    %9 = vector.extract_strided_slice %4 {offsets = [0, 0, 0], sizes = [2, 14, 14], strides = [1, 1, 1]} : vector<2x16x14xf32> to vector<2x14x14xf32>
    %10 = vector.extract_strided_slice %4 {offsets = [0, 1, 0], sizes = [2, 14, 14], strides = [1, 1, 1]} : vector<2x16x14xf32> to vector<2x14x14xf32>
    %cst_2 = arith.constant 2.000000e+00 : f32
    %11 = vector.broadcast %cst_2 : f32 to vector<2x14x14xf32>
    %12 = arith.mulf %11, %10 : vector<2x14x14xf32>
    %13 = arith.addf %9, %12 : vector<2x14x14xf32>
    %14 = vector.extract_strided_slice %4 {offsets = [0, 2, 0], sizes = [2, 14, 14], strides = [1, 1, 1]} : vector<2x16x14xf32> to vector<2x14x14xf32>
    %15 = arith.addf %13, %14 : vector<2x14x14xf32>
    %16 = vector.extract_strided_slice %8 {offsets = [0, 0, 0], sizes = [2, 14, 14], strides = [1, 1, 1]} : vector<2x16x14xf32> to vector<2x14x14xf32>
    %17 = vector.extract_strided_slice %8 {offsets = [0, 2, 0], sizes = [2, 14, 14], strides = [1, 1, 1]} : vector<2x16x14xf32> to vector<2x14x14xf32>
    %18 = arith.subf %16, %17 : vector<2x14x14xf32>
    %19 = math.absf %15 : vector<2x14x14xf32>
    %20 = math.absf %18 : vector<2x14x14xf32>
    %21 = arith.addf %19, %20 : vector<2x14x14xf32>
    %22 = vector.shape_cast %21 : vector<2x14x14xf32> to vector<1x2x14x14xf32>
    %cst_3 = arith.constant dense<0.000000e+00> : vector<1xf32>
    %23 = vector.multi_reduction <add>, %22, %cst_3 [1, 2, 3] : vector<1x2x14x14xf32> to vector<1xf32>
    %24 = vector.shape_cast %23 : vector<1xf32> to vector<1x1x1x1xf32>
    %25 = vector.extract %24[0, 0, 0, 0] : f32 from vector<1x1x1x1xf32>
    %26 = tpu.iota {dimensions = array<i32: 1>} : vector<1x8x128xi32>
    %27 = tpu.iota {dimensions = array<i32: 2>} : vector<1x8x128xi32>
    %c0_i32 = arith.constant 0 : i32
    %28 = vector.broadcast %c0_i32 : i32 to vector<1x8x128xi32>
    %29 = arith.cmpi eq, %26, %28 : vector<1x8x128xi32>
    %c0_i32_4 = arith.constant 0 : i32
    %30 = vector.broadcast %c0_i32_4 : i32 to vector<1x8x128xi32>
    %31 = arith.cmpi eq, %27, %30 : vector<1x8x128xi32>
    %32 = arith.andi %29, %31 : vector<1x8x128xi1>
    %cst_5 = arith.constant 0.000000e+00 : f32
    %33 = vector.broadcast %25 : f32 to vector<1x8x128xf32>
    %34 = vector.broadcast %cst_5 : f32 to vector<1x8x128xf32>
    %35 = arith.select %32, %33, %34 : vector<1x8x128xi1>, vector<1x8x128xf32>
    %c0_6 = arith.constant 0 : index
    %c0_7 = arith.constant 0 : index
    %c0_8 = arith.constant 0 : index
    %36 = vector.load %arg2[%c0_6, %c0_7, %c0_8] : memref<1x8x128xf32, #tpu.memory_space<vmem>>, vector<1x8x128xf32>
    tpu.vector_store %arg2[%c0_6, %c0_7, %c0_8], %35 {strides = array<i32>} : memref<1x8x128xf32, #tpu.memory_space<vmem>>, vector<1x8x128xf32>,
    return
  }
  func.func @transform_0(%arg0: i32) -> (i32, i32, i32) {
    %c0_i32 = arith.constant 0 : i32
    %c0_i32_0 = arith.constant 0 : i32
    %c0_i32_1 = arith.constant 0 : i32
    return %arg0, %c0_i32, %c0_i32_0 : i32, i32, i32
  }
  func.func @transform_1(%arg0: i32) -> (i32, i32, i32) {
    %c0_i32 = arith.constant 0 : i32
    %c0_i32_0 = arith.constant 0 : i32
    %c0_i32_1 = arith.constant 0 : i32
    return %arg0, %c0_i32, %c0_i32_0 : i32, i32, i32
  }
}

</mosaic_0001>

<bundles_post_ra>
// kernel: tpu_custom_call.1
= control target key start
LH: loop header
LB: loop body
LE: loop exit
PB: predicated region body
PF: predicated region fallthrough
CT: control target
= control target key end

     0   :  { %6 = vsyncpa [#allocation3], 0  ;;  %s292_s0 = inlined_call_operand.hbm [shape: f32[2,16,16], index: 0, kind: input, shape index: {}]   ;;  %s293_s1 = inlined_call_operand.hbm [shape: f32[1,8,128], index: 1, kind: output, shape index: {}]  }
   0x1   :  { %7 = vsyncpa [#allocation4], 0  ;;  %s246_s6 = smov [#allocation2]   ;;  %s198_s10 = scalar_lea.hbm %s292_s0, 512 }
   0x2   :  { %s13_s7 = sshll.u32 %s246_s6, 4  ;;  %p199_p0 = scmp.ne.s32.totalorder %s292_s0, %s198_s10  ;;  %s14_s7 = int_to_ptr.vmem [resolvable:$true] %s13_s7 }
   0x3   :  { %p202_p1 = scmp.lt.u32.totalorder %s198_s10, %s292_s0 }
   0x5   :  { %p204_p2 = pnand %p202_p1, %p199_p0 }
   0x7   :  { %207 = shalt.err (!%p204_p2)
}
   0x8   :  { %s208_s15 = scalar_lea.vmem %s14_s7, 512  ;;  %p213_p4 = scmp.lt.s32.totalorder %s14_s7, %s14_s7 }
   0x9   :  { %p209_p3 = scmp.ne.s32.totalorder %s14_s7, %s208_s15  ;;  %p214_p5 = scmp.lt.s32.totalorder %s208_s15, %s208_s15 }
   0xb   :  { %p215_p6 = por %p214_p5, %p213_p4 }
   0xd   :  { %p216_p7 = pnand %p215_p6, %p209_p3 }
   0xf   :  { %219 = shalt.err (!%p216_p7)
}
  0x10   :  { %s247_s16 = smov 128   ;;  %s248_s17 = smov 8  }
  0x11   :  { %19 = dma.hbm_to_vmem [thread:$0]  %s292_s0, 512, %s14_s7, [#allocation3], %s247_s16, %s247_s16, %s248_s17  }
  0x12   :  { %242 = dma.done.wait [#allocation3], 512  }
  0x13   :  { %243 = vsyncadd [#allocation3], 4294966784  ;;  %v25_v0 = vld [vmem:[#allocation2 + $0x10] sm:$0xff]  ;;  %v23_v1 = vld [vmem:[#allocation2] sm:$0xff]  ;;  %s249_s20 = smov 126   ;;  %s250_s21 = smov 127  }
  0x14   :  { %35 = vrot.lane.b32.xlu1 %v25_v0, %s249_s20  ;;  %31 = vrot.lane.b32.xlu0 %v23_v1, %s249_s20  ;;  %v26_v2 = vld [vmem:[#allocation2 + $0x18] sm:$0xff]  ;;  %v24_v3 = vld [vmem:[#allocation2 + $0x8] sm:$0xff]  ;;  %v47_v5 = vmul.f32 2.0, %v23_v1  ;;  %v49_v7 = vmul.f32 2.0, %v25_v0  ;;  %vm83_vm0 = vcmask 1046528   ;;  %vm102_vm1 = vcmask 1045504  }
  0x15   :  { %v48_v4 = vmul.f32 2.0, %v24_v3  ;;  %v50_v6 = vmul.f32 2.0, %v26_v2  ;;  %vm149_vm2 = vcmask 111616   ;;  %vm147_vm3 = vcmask 113664   ;;  %s251_s0 = smov [#allocation5]  }
  0x16   :  { %s181_s22 = sshll.u32 %s251_s0, 4  ;;  %s182_s22 = int_to_ptr.vmem [resolvable:$true] %s181_s22 }
  0x17   :  { %s220_s24 = scalar_lea.vmem %s182_s22, 128  ;;  %p225_p9 = scmp.lt.s32.totalorder %s182_s22, %s182_s22 }
  0x18   :  { %37 = vrot.lane.b32.xlu1 %v26_v2, %s249_s20  ;;  %33 = vrot.lane.b32.xlu0 %v24_v3, %s249_s20  ;;  %p221_p8 = scmp.ne.s32.totalorder %s182_s22, %s220_s24  ;;  %p226_p10 = scmp.lt.s32.totalorder %s220_s24, %s220_s24 }
  0x1a   :  { %p227_p11 = por %p226_p10, %p225_p9 }
  0x1c   :  { %57 = vrot.lane.b32.xlu1 %v48_v4, %s250_s21  ;;  %55 = vrot.lane.b32.xlu0 %v47_v5, %s250_s21  ;;  %p228_p12 = pnand %p227_p11, %p221_p8 }
  0x20   :  { %61 = vrot.lane.b32.xlu1 %v50_v6, %s250_s21  ;;  %59 = vrot.lane.b32.xlu0 %v49_v7, %s250_s21 }
  0x86   :  { %v36_v8 = vpop.permute.xlu1 %35  ;;  %v32_v9 = vpop.permute.xlu0 %31 }
  0x87   :  { %v45_v10 = vsub.f32 %v25_v0, %v36_v8  ;;  %v43_v11 = vsub.f32 %v23_v1, %v32_v9 }
  0x89   :  { %v77_v12 = vmul.f32 2.0, %v45_v10  ;;  %v75_v13 = vmul.f32 2.0, %v43_v11  ;;  %v106_v28 = vrot.slane %v45_v10, 2  ;;  %v103_v30 = vrot.slane %v43_v11, 2 }
  0x8a   :  { %v38_v14 = vpop.permute.xlu1 %37  ;;  %v34_v15 = vpop.permute.xlu0 %33 }
  0x8b   :  { %v46_v16 = vsub.f32 %v26_v2, %v38_v14  ;;  %v44_v17 = vsub.f32 %v24_v3, %v34_v15  ;;  %v87_v20 = vrot.slane %v77_v12, 1  ;;  %v84_v21 = vrot.slane %v75_v13, 1 }
  0x8d   :  { %v78_v18 = vmul.f32 2.0, %v46_v16  ;;  %v76_v19 = vmul.f32 2.0, %v44_v17  ;;  %v104_v26 = vrot.slane %v44_v17, 2  ;;  %v107_v34 = vrot.slane %v46_v16, 2 }
  0x8e   :  { %v58_v22 = vpop.permute.xlu1 %57  ;;  %v56_v23 = vpop.permute.xlu0 %55 }
  0x8f   :  { %v88_v24 = vrot.slane %v78_v18, 1  ;;  %v85_v25 = vrot.slane %v76_v19, 1  ;;  %v68_v27 = vadd.f32 %v58_v22, %v24_v3  ;;  %v67_v29 = vadd.f32 %v56_v23, %v23_v1 }
  0x90   :  { %v105_v41 = vsel %vm102_vm1, %v103_v30, %v104_v26  ;;  %v108_v53 = vsel %vm102_vm1, %v106_v28, %v107_v34 }
  0x91   :  { %v89_v31 = vsel %vm83_vm0, %v87_v20, %v88_v24  ;;  %v86_v32 = vsel %vm83_vm0, %v84_v21, %v85_v25  ;;  %v95_v33 = vadd.f32 %v85_v25, %v44_v17  ;;  %v72_v35 = vadd.f32 %v68_v27, %v34_v15 }
  0x92   :  { %v94_v36 = vadd.f32 %v86_v32, %v43_v11  ;;  %v71_v37 = vadd.f32 %v67_v29, %v32_v9  ;;  %v62_v38 = vpop.permute.xlu1 %61  ;;  %v60_v39 = vpop.permute.xlu0 %59  ;;  %v97_v40 = vadd.f32 %v88_v24, %v46_v16  ;;  %v96_v47 = vadd.f32 %v89_v31, %v45_v10 }
  0x93   :  { %v70_v42 = vadd.f32 %v62_v38, %v26_v2  ;;  %v69_v43 = vadd.f32 %v60_v39, %v25_v0  ;;  %v114_v44 = vadd.f32 %v104_v26, %v95_v33  ;;  %v122_v45 = vrot.slane %v72_v35, 2 }
  0x94   :  { %v121_v46 = vrot.slane %v71_v37, 2  ;;  %v113_v48 = vadd.f32 %v105_v41, %v94_v36  ;;  %v116_v57 = vadd.f32 %v107_v34, %v97_v40  ;;  %v115_v59 = vadd.f32 %v108_v53, %v96_v47 }
  0x95   :  { %v74_v49 = vadd.f32 %v70_v42, %v38_v14  ;;  %v73_v50 = vadd.f32 %v69_v43, %v36_v8  ;;  %v132_v51 = vsub.f32 %v72_v35, %v122_v45  ;;  %v136_v60 = vand.u32 2147483647, %v114_v44 }
  0x96   :  { %v123_v52 = vsel %vm102_vm1, %v121_v46, %v122_v45  ;;  %v135_v61 = vand.u32 2147483647, %v113_v48  ;;  %v138_v5 = vand.u32 2147483647, %v116_v57  ;;  %v137_v7 = vand.u32 2147483647, %v115_v59 }
  0x97   :  { %v131_v54 = vsub.f32 %v71_v37, %v123_v52  ;;  %v125_v55 = vrot.slane %v74_v49, 2  ;;  %v124_v56 = vrot.slane %v73_v50, 2  ;;  %v140_v58 = vand.u32 2147483647, %v132_v51 }
  0x98   :  { %v165_v24 = vlaneseq }
  0x99   :  { %v139_v62 = vand.u32 2147483647, %v131_v54  ;;  %v134_v63 = vsub.f32 %v74_v49, %v125_v55  ;;  %v126_v0 = vsel %vm102_vm1, %v124_v56, %v125_v55  ;;  %v144_v2 = vadd.f32 %v140_v58, %v136_v60 }
  0x9a   :  { %v133_v1 = vsub.f32 %v73_v50, %v126_v0  ;;  %v166_v25 = vshrl.u32 %v165_v24, 7  ;;  %v168_v26 = vand.u32 127, %v165_v24 }
  0x9b   :  { %v143_v3 = vadd.f32 %v139_v62, %v135_v61  ;;  %v142_v4 = vand.u32 2147483647, %v134_v63  ;;  %v150_v8 = vsel %vm149_vm2, %v144_v2, 0.0 }
  0x9c   :  { %v141_v6 = vand.u32 2147483647, %v133_v1  ;;  %vm169_vm4 = vcmp.eq.s32.totalorder %v166_v25, 0  ;;  %vm170_vm5 = vcmp.eq.s32.totalorder %v168_v26, 0 }
  0x9d   :  { %v148_v9 = vsel %vm147_vm3, %v143_v3, 0.0  ;;  %v146_v11 = vadd.f32 %v142_v4, %v138_v5  ;;  %vm171_vm6 = vmand %vm169_vm4, %vm170_vm5 }
  0x9e   :  { %v145_v10 = vadd.f32 %v141_v6, %v137_v7  ;;  %v151_v12 = vadd.f32 %v150_v8, %v148_v9 }
  0x9f   :  { %v154_v15 = vsel %vm149_vm2, %v146_v11, 0.0 }
  0xa0   :  { %v152_v13 = vsel %vm147_vm3, %v145_v10, 0.0 }
  0xa1   :  { %v153_v14 = vadd.f32 %v152_v13, %v151_v12 }
  0xa3   :  { %v155_v16 = vadd.f32 %v154_v15, %v153_v14 }
  0xa5   :  { %156 = vadd.xlane.f32.xlu0 %v155_v16 }
 0x132   :  { %v157_v17 = vpop.xlane.xlu0 %156 }
 0x133   :  { %v158_v18 = vrot.slane %v157_v17, 4 }
 0x135   :  { %v159_v19 = vadd.f32 %v158_v18, %v157_v17 }
 0x137   :  { %v160_v20 = vrot.slane %v159_v19, 2 }
 0x139   :  { %v161_v21 = vadd.f32 %v160_v20, %v159_v19 }
 0x13b   :  { %v162_v22 = vrot.slane %v161_v21, 1 }
 0x13d   :  { %v163_v23 = vadd.f32 %v162_v22, %v161_v21 }
 0x13f   :  { %190 = vpush %v163_v23 }
 0x170   :  { %s191_s23 = spop %190 }
 0x171   :  { %v172_v27 = vstv %s191_s23 }
 0x172   :  { %v173_v28 = vsel %vm171_vm6, %v172_v27, 0.0 }
 0x173   :  { %174 = vst [vmem:[#allocation5] sm:$0xff] %v173_v28 }
 0x174   :  { %231 = shalt.err (!%p228_p12)
}
 0x175   :  { %s232_s27 = scalar_lea.hbm %s293_s1, 128 }
 0x176   :  { %p233_p13 = scmp.ne.s32.totalorder %s293_s1, %s232_s27  ;;  %p236_p0 = scmp.lt.u32.totalorder %s232_s27, %s293_s1 }
 0x178   :  { %p238_p1 = pnand %p236_p0, %p233_p13 }
 0x17a   :  { %241 = shalt.err (!%p238_p1)
}
 0x17b   :  { %184 = dma.vmem_to_hbm [thread:$0]  %s182_s22, 128, %s293_s1, [#allocation4]  }
 0x17c   :  { %244 = dma.done.wait [#allocation4], 128  }
 0x17d   :  { %245 = vsyncadd [#allocation4], 4294967168 }
 0x17e   :  { %188 = vsyncpa [#allocation3], 1 }
 0x17f   :  { %189 = vsyncpa [#allocation4], 1 }

</bundles_post_ra>
